<compile_context>
chip_gen: v7x
topology: tpu7x:2x2x1
jax: 0.10.0
libtpu: 0.0.40
codegen_flags: <defaults>
</compile_context>

<pallas_src>
import jax
import jax.numpy as jnp
from jax.experimental import pallas as pl
from jax.experimental.pallas import tpu as pltpu


# ----------------------- tiling helpers -----------------------

_SMALL_BYTES = 256 * 1024          # below this, XLA's fused multiply wins
_BLOCK_BYTES = 2 * 1024 * 1024     # per-array per-block budget (x2 arrays x2 bufs = 8 MiB)
_LANE_CHOICES = (2048, 1024, 512, 384, 256, 128)


def _cdiv(a, b):
    return -(-a // b)


def _pick_lanes(n):
    """Largest multiple-of-128 lane width that divides n exactly (else None)."""
    for lanes in _LANE_CHOICES:
        if n % lanes == 0:
            return lanes
    return None


# ----------------------- Pallas backward kernel -----------------------

def _neg_scale_kernel(lam_ref, g_ref, o_ref):
    # grad_in = -lambda * grad_out.  Keep lambda in f32, promote the multiply,
    # then cast the product to the gradient dtype (accuracy note from review).
    lam = lam_ref[0]                                  # f32 scalar from SMEM
    o_ref[...] = (g_ref[...].astype(jnp.float32) * (-lam)).astype(o_ref.dtype)


def _neg_scale_pallas(g, lam):
    """(-lam) * g via a lane-dense, tiled, streaming Pallas kernel.

    Requires g.size to be a multiple of 128 (checked by the dispatcher).
    """
    orig_shape = g.shape
    dtype = g.dtype
    n = g.size
    itemsize = jnp.dtype(dtype).itemsize

    lam_arr = jnp.asarray(lam, dtype=jnp.float32).reshape((1,))

    lanes = _pick_lanes(n)
    rows = n // lanes
    slab = g.reshape(rows, lanes)            # zero-copy for contiguous inputs

    # Sublane alignment: 8 for 4-byte, 16 for 2-byte, 32 for 1-byte dtypes.
    sub = max(8, 32 // itemsize)

    # Dtype-aware row-tile from the byte budget.
    tm_budget = max(sub, (_BLOCK_BYTES // (lanes * itemsize)) // sub * sub)

    if rows <= sub:
        tm = rows                            # full-extent block (always legal)
    elif rows <= tm_budget:
        # Would otherwise be a single block: split into ~2 tiles so v7x's
        # second TensorCore gets half of the stream.
        tm = _cdiv(_cdiv(rows, 2), sub) * sub
    else:
        tm = tm_budget

    grid = (_cdiv(rows, tm),)                # ragged last tile handled by Pallas

    out = pl.pallas_call(
        _neg_scale_kernel,
        out_shape=jax.ShapeDtypeStruct((rows, lanes), dtype),
        grid=grid,
        in_specs=[
            pl.BlockSpec(memory_space=pltpu.MemorySpace.SMEM),  # lambda scalar
            pl.BlockSpec((tm, lanes), lambda i: (i, 0)),        # grad slab
        ],
        out_specs=pl.BlockSpec((tm, lanes), lambda i: (i, 0)),
        input_output_aliases={1: 0},         # reuse the gradient buffer in place
        compiler_params=pltpu.CompilerParams(
            dimension_semantics=("parallel",),
            vmem_limit_bytes=32 * 1024 * 1024,
        ),
    )(lam_arr, slab)

    return out.reshape(orig_shape)


def _neg_scale(g, lam):
    """Dispatcher: Pallas for large lane-aligned gradients, fused XLA otherwise."""
    lam32 = jnp.asarray(lam, dtype=jnp.float32)
    n = g.size
    if n == 0:
        return g
    itemsize = jnp.dtype(g.dtype).itemsize
    if n * itemsize < _SMALL_BYTES or _pick_lanes(n) is None:
        # Tiny or lane-ragged gradients: one fused mem-bound XLA pass, no
        # launch/pad/slice overhead (avoids the extra HBM passes jnp.pad costs).
        return (g.astype(jnp.float32) * (-lam32)).astype(g.dtype)
    return _neg_scale_pallas(g, lam32)


# ----------------------- GRL with custom VJP -----------------------

@jax.custom_vjp
def _grl(x, lam):
    # Forward is identity: no kernel, no HBM traffic.
    return x


def _grl_fwd(x, lam):
    return x, lam


def _grl_bwd(lam, g):
    # d/dx = -lambda * g ; lambda gets a zero cotangent (PyTorch returns None).
    return (_neg_scale(g, lam), jnp.zeros_like(lam))


_grl.defvjp(_grl_fwd, _grl_bwd)


def gradient_reversal(x, lambda_=1.0):
    return _grl(x, jnp.asarray(lambda_, dtype=jnp.float32))


class GradientReversalLayer:
    """JAX/Pallas equivalent of the PyTorch GradientReversalLayer."""

    def __init__(self, lambda_=1.0):
        self.lambda_ = lambda_

    def __call__(self, x):
        return gradient_reversal(x, self.lambda_)


# ----------------------- demo / smoke test -----------------------

if __name__ == "__main__":
    key = jax.random.PRNGKey(0)

    # Small NCHW input consistent with a conv-feature-map consumer.
    x = jax.random.normal(key, (2, 4, 16, 16), dtype=jnp.float32)
    layer = GradientReversalLayer(lambda_=0.5)

    # Forward: must be exact identity.
    y = jax.block_until_ready(layer(x))
    assert y.shape == x.shape and y.dtype == x.dtype
    assert jnp.allclose(y, x), "forward must be identity"

    # Backward on the small input (fast path): must be -lambda * grad_out.
    def loss(x_):
        return jnp.sum(layer(x_))

    g = jax.block_until_ready(jax.grad(loss)(x))
    assert jnp.allclose(g, jnp.full_like(x, -0.5), atol=1e-6), \
        "backward must be -lambda * grad_out"

    # Backward on a larger input: goes through the Pallas kernel end-to-end.
    x_big = jax.random.normal(jax.random.PRNGKey(1), (4, 8, 64, 64),
                              dtype=jnp.float32)          # 512 KiB > fast-path cap
    def loss_big(x_):
        return jnp.sum(layer(x_))
    g_big = jax.block_until_ready(jax.grad(loss_big)(x_big))
    assert jnp.allclose(g_big, jnp.full_like(x_big, -0.5), atol=1e-6)

    # Exercise the Pallas kernel directly (multi-step parallel grid, f32).
    gin = jax.random.normal(jax.random.PRNGKey(2), (4, 8, 64, 64), jnp.float32)
    got = jax.block_until_ready(_neg_scale_pallas(gin, jnp.float32(2.0)))
    assert got.shape == gin.shape
    assert jnp.allclose(got, -2.0 * gin, atol=1e-6)

    # bf16 gradient through the kernel (16-row sublane alignment path).
    gin16 = jax.random.normal(jax.random.PRNGKey(3), (4, 16, 128), jnp.bfloat16)
    got16 = jax.block_until_ready(_neg_scale_pallas(gin16, jnp.float32(0.25)))
    assert got16.dtype == jnp.bfloat16
    ref16 = (gin16.astype(jnp.float32) * -0.25).astype(jnp.bfloat16)
    assert jnp.allclose(got16.astype(jnp.float32), ref16.astype(jnp.float32),
                        atol=1e-2)

    # Ragged / tiny size -> fused XLA fallback, still correct.
    g2 = jax.block_until_ready(_neg_scale(jnp.ones((3, 5, 7), jnp.float32),
                                          jnp.float32(2.0)))
    assert g2.shape == (3, 5, 7)
    assert jnp.allclose(g2, -2.0)

    print("KERNEL_OK")
</pallas_src>

<mosaic_0001>
module attributes {stable_mosaic.version = 11 : i64} {
  func.func @_neg_scale_kernel(%arg0: i32, %arg1: memref<1xf32, #tpu.memory_space<smem>>, %arg2: memref<32x2048xf32, #tpu.memory_space<vmem>>, %arg3: memref<32x2048xf32, #tpu.memory_space<vmem>>) attributes {dimension_semantics = [#tpu.dimension_semantics<parallel>], iteration_bounds = array<i64: 2>, scalar_prefetch = 0 : i64, scratch_operands = 0 : i64, tpu.core_type = #tpu.core_type<tc>, window_params = [{transform_indices = @transform_0, window_bounds = array<i64: 1>}, {transform_indices = @transform_1, window_bounds = array<i64: 32, 2048>}, {transform_indices = @transform_2, window_bounds = array<i64: 32, 2048>}]} {
    %c0 = arith.constant 0 : index
    %0 = memref.load %arg1[%c0] : memref<1xf32, #tpu.memory_space<smem>>
    %c0_0 = arith.constant 0 : index
    %c0_1 = arith.constant 0 : index
    %1 = vector.load %arg2[%c0_0, %c0_1] : memref<32x2048xf32, #tpu.memory_space<vmem>>, vector<32x2048xf32>
    %cst = arith.constant 0.000000e+00 : f32
    %2 = arith.subf %cst, %0 : f32
    %3 = vector.broadcast %2 : f32 to vector<32x2048xf32>
    %4 = arith.mulf %1, %3 : vector<32x2048xf32>
    %c0_2 = arith.constant 0 : index
    %c0_3 = arith.constant 0 : index
    %5 = vector.load %arg3[%c0_2, %c0_3] : memref<32x2048xf32, #tpu.memory_space<vmem>>, vector<32x2048xf32>
    tpu.vector_store %arg3[%c0_2, %c0_3], %4 {strides = array<i32>} : memref<32x2048xf32, #tpu.memory_space<vmem>>, vector<32x2048xf32>,
    return
  }
  func.func @transform_0(%arg0: i32) -> i32 {
    %c0_i32 = arith.constant 0 : i32
    %c0_i32_0 = arith.constant 0 : i32
    return %c0_i32 : i32
  }
  func.func @transform_1(%arg0: i32) -> (i32, i32) {
    %c0_i32 = arith.constant 0 : i32
    %c0_i32_0 = arith.constant 0 : i32
    return %arg0, %c0_i32 : i32, i32
  }
  func.func @transform_2(%arg0: i32) -> (i32, i32) {
    %c0_i32 = arith.constant 0 : i32
    %c0_i32_0 = arith.constant 0 : i32
    return %arg0, %c0_i32 : i32, i32
  }
}

</mosaic_0001>

<bundles_post_ra>
// kernel: tpu_custom_call.1
= control target key start
LH: loop header
LB: loop body
LE: loop exit
PB: predicated region body
PF: predicated region fallthrough
CT: control target
= control target key end

     0   :  { %s1006_s0 = inlined_call_operand.<no memory space> [shape: f32[1], index: 0, kind: input, shape index: {}]   ;;  %s1007_s1 = inlined_call_operand.hbm [shape: f32[64,2048], index: 1, kind: input, shape index: {}, may-alias: {1,2}]   ;;  %s1008_s2 = inlined_call_operand.hbm [shape: f32[64,2048], index: 2, kind: output, shape index: {}, may-alias: {1,2}]  }
   0x1   :  { %7 = sst [smem:[#allocation2]] %s1006_s0 }
   0x2   :  { %8 = vsyncpa [#allocation4], 0 }
   0x3   :  { %10 = vsyncpa [#allocation4 + $0x1], 0 }
   0x4   :  { %11 = vsyncpa [#allocation5], 0 }
   0x5   :  { %13 = vsyncpa [#allocation5 + $0x1], 0  ;;  %s641_s11 = smov 0   ;;  %s643_s12 = smov 0  }
   0x6   :  { %s645_s13 = smov 0   ;;  %s647_s14 = smov 0  }
   0x7 LB: > { %s662_s0 = sadd.s32 4294967295, %s615_s14   ;;  %s449_s15 = sadd.s32 4294967294, %s615_s14   ;;  %s615_s14 = sphi %s647_s14, %s1021_s14   ;;  %s611_s13 = sphi %s645_s13, %s1020_s13   ;;  %s607_s12 = sphi %s643_s12, %s1019_s12   ;;  %s603_s11 = sphi %s641_s11, %s1018_s11  }
   0x8   : > { %s666_s16 = sadd.s32 1, %s615_s14   ;;  %s47_s17 = sadd.s32 1, %s611_s13 }
   0x9   : > { %s44_s18 = ssub.s32 %s615_s14, %s666_s16  ;;  %p54_p0 = scmp.ne.s32.totalorder %s611_s13, %s607_s12 }
   0xa   : > { %p45_p1 = scmp.eq.s32.totalorder %s44_s18, 0  ;;  %p55_p2 = scmp.eq.s32.totalorder %s615_s14, 0 }
   0xb   : > { %p60_p3 = scmp.ne.s32.totalorder %s607_s12, %s603_s11  ;;  %p61_p4 = scmp.eq.s32.totalorder %s662_s0, 0 }
   0xc   : > { %s678_s19 = scalar_select %p45_p1, %s611_s13, %s47_s17  }
   0xd   : > { %p680_p5 = por %p55_p2, %p54_p0  ;;  %p684_p6 = por %p61_p4, %p60_p3 }
   0xe   : > { %p84_p7 = scmp.eq.s32.totalorder %s662_s0, 1  ;;  %p90_p8 = scmp.eq.s32.totalorder %s449_s15, 1 }
   0xf   : > { %p481_p10 = scmp.lt.s32.totalorder %s615_s14, 2  ;;  %s113_s24 = sand.u32 1, %s611_s13  }
  0x10   : > { %p691_p11 = por %p84_p7, %p54_p0  ;;  %p695_p12 = por %p90_p8, %p60_p3 }
  0x11   : > { %s466_s25 = sshll.u32 %s615_s14, 13  ;;  %s452_s26 = sshll.u32 %s113_s24, 9 }
  0x12   : > { %s1012_s22 = scalar_select %p691_p11, 1, 0 }
  0x13   : > { %s1013_s23 = scalar_select %p695_p12, 1, 0 }
  0x14   : > { %s704_s29 = scalar_lea.hbm %s1007_s1, %s466_s25  ;;  %s117_s30 = scalar_lea.vmem [#allocation3], %s452_s26 }
  0x15   : > { %s125_s3 = sshll.u32 %s117_s30, 4  ;;  %p708_p13 = pnand %p481_p10, %p680_p5  ;;  %s712_s3 = int_to_ptr.vmem [resolvable:$true] %s125_s3 }
  0x16   : > { %s714_s5 = scalar_lea.sflag [#allocation4], %s113_s24  ;;  %s519_s6 = scalar_lea.hbm %s704_s29, 8192 }
  0x17   : > { %p520_p0 = scmp.ne.s32.totalorder %s704_s29, %s519_s6  ;;  %p521_p1 = pneg %p708_p13 }
  0x18   : > { %s524_s9 = scalar_lea.hbm %s1007_s1, 16384  ;;  %p525_p4 = scmp.lt.u32.totalorder %s704_s29, %s1007_s1 }
  0x19   : > { %p522_p2 = pnand %p521_p1, %p520_p0  ;;  %p526_p5 = scmp.lt.u32.totalorder %s524_s9, %s519_s6 }
  0x1a   : > { %p528_p8 = scmp.lt.u32.totalorder %s519_s6, %s704_s29 }
  0x1b   : > { %p523_p3 = pneg %p522_p2  ;;  %p527_p7 = por %p526_p5, %p525_p4 }
  0x1d   : > { %p529_p10 = por %p528_p8, %p527_p7 }
  0x1f   : > { %p530_p9 = pnand %p529_p10, %p523_p3 }
  0x21   : > { %533 = shalt.err (!%p530_p9)
}
  0x22   : > { %s534_s17 = scalar_lea.vmem %s712_s3, 8192  ;;  %s617_s18 = smov [#allocation3]  }
  0x23   : > { %p535_p0 = scmp.ne.s32.totalorder %s712_s3, %s534_s17  ;;  %s539_s20 = sshll.u32 %s617_s18, 4  ;;  %s540_s20 = int_to_ptr.vmem [resolvable:$false] %s539_s20 }
  0x24   : > { %s541_s24 = scalar_lea.vmem %s540_s20, 16384  ;;  %p542_p11 = scmp.lt.s32.totalorder %s712_s3, %s540_s20 }
  0x25   : > { %p537_p2 = pnand %p535_p0, %p521_p1  ;;  %p543_p4 = scmp.lt.s32.totalorder %s541_s24, %s534_s17 }
  0x27   : > { %p538_p12 = pneg %p537_p2  ;;  %p544_p5 = por %p543_p4, %p542_p11 }
  0x29   : > { %p545_p7 = pnand %p544_p5, %p538_p12 }
  0x2b   : > { %548 = shalt.err (!%p545_p7)
}
  0x2c   : > { %s618_s25 = smov 2048   ;;  %s619_s26 = smov 128  }
  0x2d   : > { %476 = dma.hbm_to_vmem [thread:$0]  (!%p708_p13), %s704_s29, 8192, %s712_s3, %s714_s5, %s618_s25, %s618_s25, %s619_s26  }
  0x2e   : > { %p456_p9 = scmp.ge.s32.totalorder %s615_s14, 1  ;;  %p133_p1 = scmp.lt.s32.totalorder %s615_s14, 3 }
  0x30   : > { %p134_p3 = pnand %p456_p9, %p133_p1 }
  0x31   : > { %s745_s27 = sand.u32 (!%p134_p3), 1, %s607_s12  }
  0x32   : > { %137 = sbr.rel (%p134_p3) target bundleno = 115 (0x73), region = 28  ;;  %s457_s28 = sshll.u32 (!%p134_p3), %s745_s27, 9 }
  0x33   : > { %s140_s30 = scalar_lea.sflag (!%p134_p3), [#allocation4], %s745_s27  ;;  %s751_s6 = scalar_lea.vmem (!%p134_p3), [#allocation3], %s457_s28 }
  0x39   : > { %594 = dma.done.wait (%p684_p6), %s140_s30, 8192  }
  0x3a   : > { %596 = vsyncadd (%p684_p6), %s140_s30, 4294959104  ;;  %s166_s29 = sld [smem:[#allocation2]]  ;;  %v167_v0 = vld [vmem:[%s751_s6] sm:$0xff]  ;;  %v168_v1 = vld [vmem:[%s751_s6 + $0x8] sm:$0xff]  ;;  %s784_s21 = scalar_lea.vmem [#allocation6], %s457_s28 }
  0x3b   : > { %v169_v2 = vld [vmem:[%s751_s6 + $0x10] sm:$0xff]  ;;  %v170_v3 = vld [vmem:[%s751_s6 + $0x18] sm:$0xff]  ;;  %v171_v4 = vld [vmem:[%s751_s6 + $0x20] sm:$0xff]  ;;  %s468_s4 = sshll.u32 %s662_s0, 13  ;;  %s376_s5 = sshll.u32 %s784_s21, 4  ;;  %s954_s5 = int_to_ptr.vmem [resolvable:$true] %s376_s5 }
  0x3c   : > { %v172_v5 = vld [vmem:[%s751_s6 + $0x28] sm:$0xff]  ;;  %v173_v7 = vld [vmem:[%s751_s6 + $0x30] sm:$0xff]  ;;  %v174_v8 = vld [vmem:[%s751_s6 + $0x38] sm:$0xff]  ;;  %s952_s8 = scalar_lea.hbm %s1008_s2, %s468_s4  ;;  %s362_s9 = scalar_lea.sflag [#allocation5], %s745_s27 }
  0x3d   : > { %v175_v9 = vld [vmem:[%s751_s6 + $0x40] sm:$0xff]  ;;  %v176_v14 = vld [vmem:[%s751_s6 + $0x48] sm:$0xff]  ;;  %v177_v15 = vld [vmem:[%s751_s6 + $0x50] sm:$0xff]  ;;  %s549_s10 = scalar_lea.vmem %s954_s5, 8192  ;;  %p1015_p11 = scmp.ne.s32.totalorder %s1012_s22, 0 }
  0x3e   : > { %v178_v16 = vld [vmem:[%s751_s6 + $0x58] sm:$0xff]  ;;  %v179_v21 = vld [vmem:[%s751_s6 + $0x60] sm:$0xff]  ;;  %v180_v22 = vld [vmem:[%s751_s6 + $0x68] sm:$0xff]  ;;  %p550_p6 = scmp.ne.s32.totalorder %s954_s5, %s549_s10  ;;  %s620_s15 = smov [#allocation6]  }
  0x3f   : > { %v181_v23 = vld [vmem:[%s751_s6 + $0x70] sm:$0xff]  ;;  %v182_v28 = vld [vmem:[%s751_s6 + $0x78] sm:$0xff]  ;;  %v183_v29 = vld [vmem:[%s751_s6 + $0x80] sm:$0xff]  ;;  %s553_s17 = sshll.u32 %s620_s15, 4  ;;  %s554_s17 = int_to_ptr.vmem [resolvable:$false] %s553_s17 }
  0x40   : > { %s231_s3 = ssub.f32 0.0, %s166_s29  ;;  %v184_v30 = vld [vmem:[%s751_s6 + $0x88] sm:$0xff]  ;;  %v185_v35 = vld [vmem:[%s751_s6 + $0x90] sm:$0xff]  ;;  %v186_v36 = vld [vmem:[%s751_s6 + $0x98] sm:$0xff]  ;;  %p551_p12 = pnand %p550_p6, %p1015_p11 }
  0x41   : > { %v187_v37 = vld [vmem:[%s751_s6 + $0xa0] sm:$0xff]  ;;  %v188_v42 = vld [vmem:[%s751_s6 + $0xa8] sm:$0xff]  ;;  %v189_v43 = vld [vmem:[%s751_s6 + $0xb0] sm:$0xff]  ;;  %s555_s18 = scalar_lea.vmem %s554_s17, 16384  ;;  %p556_p8 = scmp.lt.s32.totalorder %s954_s5, %s554_s17 }
  0x42   : > { %v763_v6 = vstv %s231_s3  ;;  %v190_v44 = vld [vmem:[%s751_s6 + $0xb8] sm:$0xff]  ;;  %v191_v49 = vld [vmem:[%s751_s6 + $0xc0] sm:$0xff]  ;;  %v192_v50 = vld [vmem:[%s751_s6 + $0xc8] sm:$0xff]  ;;  %p552_p13 = pneg %p551_p12  ;;  %p557_p10 = scmp.lt.s32.totalorder %s555_s18, %s549_s10 }
  0x43   : > { %v233_v10 = vmul.f32 %v763_v6, %v167_v0  ;;  %v234_v11 = vmul.f32 %v763_v6, %v168_v1  ;;  %v235_v12 = vmul.f32 %v763_v6, %v169_v2  ;;  %v236_v13 = vmul.f32 %v763_v6, %v170_v3  ;;  %v193_v51 = vld [vmem:[%s751_s6 + $0xd0] sm:$0xff]  ;;  %v194_v55 = vld [vmem:[%s751_s6 + $0xd8] sm:$0xff]  ;;  %v195_v56 = vld [vmem:[%s751_s6 + $0xe0] sm:$0xff] }
  0x44   : > { %v237_v17 = vmul.f32 %v763_v6, %v171_v4  ;;  %v238_v18 = vmul.f32 %v763_v6, %v172_v5  ;;  %v239_v19 = vmul.f32 %v763_v6, %v173_v7  ;;  %v240_v20 = vmul.f32 %v763_v6, %v174_v8  ;;  %v196_v57 = vld [vmem:[%s751_s6 + $0xe8] sm:$0xff]  ;;  %v197_v61 = vld [vmem:[%s751_s6 + $0xf0] sm:$0xff]  ;;  %v198_v62 = vld [vmem:[%s751_s6 + $0xf8] sm:$0xff]  ;;  %p558_p0 = por %p557_p10, %p556_p8 }
  0x45   : > { %297 = vst [vmem:[%s784_s21] sm:$0xff] %v233_v10  ;;  %298 = vst [vmem:[%s784_s21 + $0x8] sm:$0xff] %v234_v11  ;;  %v241_v24 = vmul.f32 %v763_v6, %v175_v9  ;;  %v242_v25 = vmul.f32 %v763_v6, %v176_v14  ;;  %v243_v26 = vmul.f32 %v763_v6, %v177_v15  ;;  %v199_v63 = vld [vmem:[%s751_s6 + $0x100] sm:$0xff]  ;;  %v200_v3 = vld [vmem:[%s751_s6 + $0x108] sm:$0xff] }
  0x46   : > { %299 = vst [vmem:[%s784_s21 + $0x10] sm:$0xff] %v235_v12  ;;  %300 = vst [vmem:[%s784_s21 + $0x18] sm:$0xff] %v236_v13  ;;  %v244_v27 = vmul.f32 %v763_v6, %v178_v16  ;;  %v245_v31 = vmul.f32 %v763_v6, %v179_v21  ;;  %v246_v32 = vmul.f32 %v763_v6, %v180_v22  ;;  %v201_v4 = vld [vmem:[%s751_s6 + $0x110] sm:$0xff]  ;;  %v202_v5 = vld [vmem:[%s751_s6 + $0x118] sm:$0xff]  ;;  %p559_p2 = pnand %p558_p0, %p552_p13 }
  0x47   : > { %301 = vst [vmem:[%s784_s21 + $0x20] sm:$0xff] %v237_v17  ;;  %302 = vst [vmem:[%s784_s21 + $0x28] sm:$0xff] %v238_v18  ;;  %v247_v33 = vmul.f32 %v763_v6, %v181_v23  ;;  %v248_v34 = vmul.f32 %v763_v6, %v182_v28  ;;  %v249_v38 = vmul.f32 %v763_v6, %v183_v29  ;;  %v203_v10 = vld [vmem:[%s751_s6 + $0x120] sm:$0xff]  ;;  %v204_v11 = vld [vmem:[%s751_s6 + $0x128] sm:$0xff] }
  0x48   : > { %303 = vst [vmem:[%s784_s21 + $0x30] sm:$0xff] %v239_v19  ;;  %304 = vst [vmem:[%s784_s21 + $0x38] sm:$0xff] %v240_v20  ;;  %v250_v39 = vmul.f32 %v763_v6, %v184_v30  ;;  %v251_v40 = vmul.f32 %v763_v6, %v185_v35  ;;  %v252_v41 = vmul.f32 %v763_v6, %v186_v36  ;;  %v205_v12 = vld [vmem:[%s751_s6 + $0x130] sm:$0xff]  ;;  %v206_v16 = vld [vmem:[%s751_s6 + $0x138] sm:$0xff] }
  0x49   : > { %305 = vst [vmem:[%s784_s21 + $0x40] sm:$0xff] %v241_v24  ;;  %306 = vst [vmem:[%s784_s21 + $0x48] sm:$0xff] %v242_v25  ;;  %v253_v45 = vmul.f32 %v763_v6, %v187_v37  ;;  %v254_v46 = vmul.f32 %v763_v6, %v188_v42  ;;  %v255_v47 = vmul.f32 %v763_v6, %v189_v43  ;;  %v207_v17 = vld [vmem:[%s751_s6 + $0x140] sm:$0xff]  ;;  %v208_v18 = vld [vmem:[%s751_s6 + $0x148] sm:$0xff] }
  0x4a   : > { %307 = vst [vmem:[%s784_s21 + $0x50] sm:$0xff] %v243_v26  ;;  %308 = vst [vmem:[%s784_s21 + $0x58] sm:$0xff] %v244_v27  ;;  %v256_v48 = vmul.f32 %v763_v6, %v190_v44  ;;  %v257_v52 = vmul.f32 %v763_v6, %v191_v49  ;;  %v258_v53 = vmul.f32 %v763_v6, %v192_v50  ;;  %v209_v22 = vld [vmem:[%s751_s6 + $0x150] sm:$0xff]  ;;  %v210_v23 = vld [vmem:[%s751_s6 + $0x158] sm:$0xff] }
  0x4b   : > { %309 = vst [vmem:[%s784_s21 + $0x60] sm:$0xff] %v245_v31  ;;  %310 = vst [vmem:[%s784_s21 + $0x68] sm:$0xff] %v246_v32  ;;  %v259_v54 = vmul.f32 %v763_v6, %v193_v51  ;;  %v260_v58 = vmul.f32 %v763_v6, %v194_v55  ;;  %v261_v59 = vmul.f32 %v763_v6, %v195_v56  ;;  %v211_v24 = vld [vmem:[%s751_s6 + $0x160] sm:$0xff]  ;;  %v212_v28 = vld [vmem:[%s751_s6 + $0x168] sm:$0xff] }
  0x4c   : > { %311 = vst [vmem:[%s784_s21 + $0x70] sm:$0xff] %v247_v33  ;;  %312 = vst [vmem:[%s784_s21 + $0x78] sm:$0xff] %v248_v34  ;;  %v262_v60 = vmul.f32 %v763_v6, %v196_v57  ;;  %v263_v0 = vmul.f32 %v763_v6, %v197_v61  ;;  %v264_v1 = vmul.f32 %v763_v6, %v198_v62  ;;  %v213_v29 = vld [vmem:[%s751_s6 + $0x170] sm:$0xff]  ;;  %v214_v30 = vld [vmem:[%s751_s6 + $0x178] sm:$0xff] }
  0x4d   : > { %313 = vst [vmem:[%s784_s21 + $0x80] sm:$0xff] %v249_v38  ;;  %314 = vst [vmem:[%s784_s21 + $0x88] sm:$0xff] %v250_v39  ;;  %v265_v2 = vmul.f32 %v763_v6, %v199_v63  ;;  %v266_v7 = vmul.f32 %v763_v6, %v200_v3  ;;  %v267_v8 = vmul.f32 %v763_v6, %v201_v4  ;;  %v215_v34 = vld [vmem:[%s751_s6 + $0x180] sm:$0xff]  ;;  %v216_v35 = vld [vmem:[%s751_s6 + $0x188] sm:$0xff] }
  0x4e   : > { %315 = vst [vmem:[%s784_s21 + $0x90] sm:$0xff] %v251_v40  ;;  %316 = vst [vmem:[%s784_s21 + $0x98] sm:$0xff] %v252_v41  ;;  %v268_v9 = vmul.f32 %v763_v6, %v202_v5  ;;  %v269_v13 = vmul.f32 %v763_v6, %v203_v10  ;;  %v270_v14 = vmul.f32 %v763_v6, %v204_v11  ;;  %v217_v36 = vld [vmem:[%s751_s6 + $0x190] sm:$0xff]  ;;  %v218_v40 = vld [vmem:[%s751_s6 + $0x198] sm:$0xff] }
  0x4f   : > { %317 = vst [vmem:[%s784_s21 + $0xa0] sm:$0xff] %v253_v45  ;;  %318 = vst [vmem:[%s784_s21 + $0xa8] sm:$0xff] %v254_v46  ;;  %v271_v15 = vmul.f32 %v763_v6, %v205_v12  ;;  %v272_v19 = vmul.f32 %v763_v6, %v206_v16  ;;  %v273_v20 = vmul.f32 %v763_v6, %v207_v17  ;;  %v219_v41 = vld [vmem:[%s751_s6 + $0x1a0] sm:$0xff]  ;;  %v220_v42 = vld [vmem:[%s751_s6 + $0x1a8] sm:$0xff] }
  0x50   : > { %319 = vst [vmem:[%s784_s21 + $0xb0] sm:$0xff] %v255_v47  ;;  %320 = vst [vmem:[%s784_s21 + $0xb8] sm:$0xff] %v256_v48  ;;  %v274_v21 = vmul.f32 %v763_v6, %v208_v18  ;;  %v275_v25 = vmul.f32 %v763_v6, %v209_v22  ;;  %v276_v26 = vmul.f32 %v763_v6, %v210_v23  ;;  %v221_v46 = vld [vmem:[%s751_s6 + $0x1b0] sm:$0xff]  ;;  %v222_v47 = vld [vmem:[%s751_s6 + $0x1b8] sm:$0xff] }
  0x51   : > { %321 = vst [vmem:[%s784_s21 + $0xc0] sm:$0xff] %v257_v52  ;;  %322 = vst [vmem:[%s784_s21 + $0xc8] sm:$0xff] %v258_v53  ;;  %v277_v27 = vmul.f32 %v763_v6, %v211_v24  ;;  %v278_v31 = vmul.f32 %v763_v6, %v212_v28  ;;  %v279_v32 = vmul.f32 %v763_v6, %v213_v29  ;;  %v223_v48 = vld [vmem:[%s751_s6 + $0x1c0] sm:$0xff]  ;;  %v224_v52 = vld [vmem:[%s751_s6 + $0x1c8] sm:$0xff] }
  0x52   : > { %323 = vst [vmem:[%s784_s21 + $0xd0] sm:$0xff] %v259_v54  ;;  %324 = vst [vmem:[%s784_s21 + $0xd8] sm:$0xff] %v260_v58  ;;  %v280_v33 = vmul.f32 %v763_v6, %v214_v30  ;;  %v281_v37 = vmul.f32 %v763_v6, %v215_v34  ;;  %v282_v38 = vmul.f32 %v763_v6, %v216_v35  ;;  %v225_v53 = vld [vmem:[%s751_s6 + $0x1d0] sm:$0xff]  ;;  %v226_v54 = vld [vmem:[%s751_s6 + $0x1d8] sm:$0xff] }
  0x53   : > { %325 = vst [vmem:[%s784_s21 + $0xe0] sm:$0xff] %v261_v59  ;;  %326 = vst [vmem:[%s784_s21 + $0xe8] sm:$0xff] %v262_v60  ;;  %v283_v39 = vmul.f32 %v763_v6, %v217_v36  ;;  %v284_v43 = vmul.f32 %v763_v6, %v218_v40  ;;  %v285_v44 = vmul.f32 %v763_v6, %v219_v41  ;;  %v227_v58 = vld [vmem:[%s751_s6 + $0x1e0] sm:$0xff]  ;;  %v228_v59 = vld [vmem:[%s751_s6 + $0x1e8] sm:$0xff] }
  0x54   : > { %327 = vst [vmem:[%s784_s21 + $0xf0] sm:$0xff] %v263_v0  ;;  %328 = vst [vmem:[%s784_s21 + $0xf8] sm:$0xff] %v264_v1  ;;  %v286_v45 = vmul.f32 %v763_v6, %v220_v42  ;;  %v287_v49 = vmul.f32 %v763_v6, %v221_v46  ;;  %v288_v50 = vmul.f32 %v763_v6, %v222_v47  ;;  %v229_v60 = vld [vmem:[%s751_s6 + $0x1f0] sm:$0xff]  ;;  %v230_v0 = vld [vmem:[%s751_s6 + $0x1f8] sm:$0xff] }
  0x55   : > { %329 = vst [vmem:[%s784_s21 + $0x100] sm:$0xff] %v265_v2  ;;  %330 = vst [vmem:[%s784_s21 + $0x108] sm:$0xff] %v266_v7  ;;  %v289_v51 = vmul.f32 %v763_v6, %v223_v48  ;;  %v290_v55 = vmul.f32 %v763_v6, %v224_v52  ;;  %v291_v56 = vmul.f32 %v763_v6, %v225_v53 }
  0x56   : > { %331 = vst [vmem:[%s784_s21 + $0x110] sm:$0xff] %v267_v8  ;;  %332 = vst [vmem:[%s784_s21 + $0x118] sm:$0xff] %v268_v9  ;;  %v292_v57 = vmul.f32 %v763_v6, %v226_v54  ;;  %v293_v61 = vmul.f32 %v763_v6, %v227_v58  ;;  %v294_v62 = vmul.f32 %v763_v6, %v228_v59 }
  0x57   : > { %333 = vst [vmem:[%s784_s21 + $0x120] sm:$0xff] %v269_v13  ;;  %334 = vst [vmem:[%s784_s21 + $0x128] sm:$0xff] %v270_v14  ;;  %v295_v63 = vmul.f32 %v763_v6, %v229_v60  ;;  %v296_v1 = vmul.f32 %v763_v6, %v230_v0 }
  0x58   : > { %335 = vst [vmem:[%s784_s21 + $0x130] sm:$0xff] %v271_v15  ;;  %336 = vst [vmem:[%s784_s21 + $0x138] sm:$0xff] %v272_v19 }
  0x59   : > { %337 = vst [vmem:[%s784_s21 + $0x140] sm:$0xff] %v273_v20  ;;  %338 = vst [vmem:[%s784_s21 + $0x148] sm:$0xff] %v274_v21 }
  0x5a   : > { %339 = vst [vmem:[%s784_s21 + $0x150] sm:$0xff] %v275_v25  ;;  %340 = vst [vmem:[%s784_s21 + $0x158] sm:$0xff] %v276_v26 }
  0x5b   : > { %341 = vst [vmem:[%s784_s21 + $0x160] sm:$0xff] %v277_v27  ;;  %342 = vst [vmem:[%s784_s21 + $0x168] sm:$0xff] %v278_v31 }
  0x5c   : > { %343 = vst [vmem:[%s784_s21 + $0x170] sm:$0xff] %v279_v32  ;;  %344 = vst [vmem:[%s784_s21 + $0x178] sm:$0xff] %v280_v33 }
  0x5d   : > { %345 = vst [vmem:[%s784_s21 + $0x180] sm:$0xff] %v281_v37  ;;  %346 = vst [vmem:[%s784_s21 + $0x188] sm:$0xff] %v282_v38 }
  0x5e   : > { %347 = vst [vmem:[%s784_s21 + $0x190] sm:$0xff] %v283_v39  ;;  %348 = vst [vmem:[%s784_s21 + $0x198] sm:$0xff] %v284_v43 }
  0x5f   : > { %349 = vst [vmem:[%s784_s21 + $0x1a0] sm:$0xff] %v285_v44  ;;  %350 = vst [vmem:[%s784_s21 + $0x1a8] sm:$0xff] %v286_v45 }
  0x60   : > { %351 = vst [vmem:[%s784_s21 + $0x1b0] sm:$0xff] %v287_v49  ;;  %352 = vst [vmem:[%s784_s21 + $0x1b8] sm:$0xff] %v288_v50 }
  0x61   : > { %353 = vst [vmem:[%s784_s21 + $0x1c0] sm:$0xff] %v289_v51  ;;  %354 = vst [vmem:[%s784_s21 + $0x1c8] sm:$0xff] %v290_v55 }
  0x62   : > { %355 = vst [vmem:[%s784_s21 + $0x1d0] sm:$0xff] %v291_v56  ;;  %356 = vst [vmem:[%s784_s21 + $0x1d8] sm:$0xff] %v292_v57 }
  0x63   : > { %357 = vst [vmem:[%s784_s21 + $0x1e0] sm:$0xff] %v293_v61  ;;  %358 = vst [vmem:[%s784_s21 + $0x1e8] sm:$0xff] %v294_v62 }
  0x64   : > { %359 = vst [vmem:[%s784_s21 + $0x1f0] sm:$0xff] %v295_v63  ;;  %360 = vst [vmem:[%s784_s21 + $0x1f8] sm:$0xff] %v296_v1 }
  0x65   : > { %562 = shalt.err (!%p559_p2)
}
  0x66   : > { %s563_s20 = scalar_lea.hbm %s952_s8, 8192  ;;  %s567_s26 = scalar_lea.hbm %s1008_s2, 16384 }
  0x67   : > { %p564_p4 = scmp.ne.s32.totalorder %s952_s8, %s563_s20  ;;  %p568_p9 = scmp.lt.u32.totalorder %s952_s8, %s1008_s2 }
  0x68   : > { %p569_p1 = scmp.lt.u32.totalorder %s567_s26, %s563_s20  ;;  %p571_p6 = scmp.lt.u32.totalorder %s563_s20, %s952_s8 }
  0x69   : > { %p565_p5 = pnand %p564_p4, %p1015_p11 }
  0x6a   : > { %p570_p3 = por %p569_p1, %p568_p9 }
  0x6b   : > { %p566_p7 = pneg %p565_p5 }
  0x6c   : > { %p572_p12 = por %p571_p6, %p570_p3 }
  0x6e   : > { %p573_p13 = pnand %p572_p12, %p566_p7 }
  0x70   : > { %576 = shalt.err (!%p573_p13)
}
  0x71   : > { %s621_s6 = smov 2048   ;;  %s622_s29 = smov 128  }
  0x72   : > { %471 = dma.vmem_to_hbm [thread:$0]  (%p1015_p11), %s954_s5, 8192, %s952_s8, %s362_s9, %s621_s6, %s621_s6, %s622_s29  }
  0x73 PF: > { %s391_s3 = sand.u32 1, %s603_s11   ;;  %p1016_p8 = scmp.ne.s32.totalorder %s1013_s23, 0 }
  0x74   : > { %p1017_p10 = scmp.ge.s32.totalorder %s615_s14, 2  ;;  %s392_s21 = scalar_lea.sflag [#allocation5], %s391_s3 }
  0x76   : > { %p478_p0 = pnand %p1017_p10, %p1016_p8 }
  0x78   : > { %598 = dma.done.wait (!%p478_p0), %s392_s21, 8192  }
  0x79   : > { %600 = vsyncadd (!%p478_p0), %s392_s21, 4294959104  ;;  %p16_p2 = scmp.ge.s32.totalorder %s666_s16, 4   ;;  %s1018_s11 = smov %s607_s12 }
  0x7a   : > { %s1019_s12 = smov %s611_s13  ;;  %s1020_s13 = smov %s678_s19 }
  0x7b   : > { %s1021_s14 = smov %s666_s16  ;;  %18 = sbr.rel (!%p16_p2) target bundleno = 7 (0x7), region = 73 }
  0x82   :  { %397 = vsyncpa [#allocation4], 1 }
  0x83   :  { %399 = vsyncpa [#allocation4 + $0x1], 1 }
  0x84   :  { %400 = vsyncpa [#allocation5], 1 }
  0x85   :  { %402 = vsyncpa [#allocation5 + $0x1], 1 }

</bundles_post_ra>
